<compile_context>
chip_gen: v6e
topology: v6e:2x2x1
jax: 0.10.0
libtpu: 0.0.40
codegen_flags: <defaults>
</compile_context>

<pallas_src>
import numpy as np
import jax
import jax.numpy as jnp
from jax import lax
from jax.experimental import pallas as pl
from jax.experimental.pallas import tpu as pltpu

EPS = 1e-5


def _make_kernel(N, H, W, C):
    R = N * H            # rows of the lane-dense slab
    L = W * C            # lane dim (== 128 at the test shape)
    inv_count = 1.0 / float(N * H * W)

    def kernel(x_ref, wk1_ref, wk2_ref, agg_ref,
               g1_ref, b1_ref, g2_ref, b2_ref, out_ref):
        x = x_ref[...]                                            # (R, L) f32

        # row index within each image (0..H-1), broadcast over lanes
        row_in_img = lax.broadcasted_iota(jnp.int32, (N, H, L), 1).reshape(R, L)
        top = row_in_img == 0
        bot = row_in_img == H - 1

        def conv3x3(inp, wk_ref):
            # H-neighbours via sublane rotation; zero rows that crossed an
            # image boundary -> implicit zero padding along H.
            prev_row = pltpu.roll(inp, 1, 0)                      # [r] = inp[r-1]
            next_row = pltpu.roll(inp, R - 1, 0)                  # [r] = inp[r+1]
            prev_row = jnp.where(top, 0.0, prev_row)
            next_row = jnp.where(bot, 0.0, next_row)
            acc = jnp.dot(prev_row, wk_ref[0],
                          preferred_element_type=jnp.float32)
            acc = acc + jnp.dot(inp, wk_ref[1],
                                preferred_element_type=jnp.float32)
            acc = acc + jnp.dot(next_row, wk_ref[2],
                                preferred_element_type=jnp.float32)
            return acc

        def bn_fold(y, g_l, b_l):
            # one-pass batch stats folded into a per-lane scale / bias
            s1 = jnp.sum(y, axis=0, keepdims=True)                # (1, L)
            s2 = jnp.sum(y * y, axis=0, keepdims=True)            # (1, L)
            stats = jnp.concatenate([s1, s2], axis=0)             # (2, L)
            # channel-sum + broadcast over the W lane-groups, stays lane-dense
            agg = jnp.dot(stats, agg_ref[...],
                          preferred_element_type=jnp.float32) * inv_count
            mean_l = agg[0:1, :]
            var_l = agg[1:2, :] - mean_l * mean_l                 # biased var
            scale_l = g_l * lax.rsqrt(var_l + EPS)
            bias_l = b_l - mean_l * scale_l
            return scale_l, bias_l

        # conv1 -> bn1 -> relu
        o1 = conv3x3(x, wk1_ref)
        sc1, bi1 = bn_fold(o1, g1_ref[...], b1_ref[...])
        o1 = jnp.maximum(o1 * sc1 + bi1, 0.0)

        # conv2 -> bn2 -> +residual -> relu   (single lane-dense store)
        o2 = conv3x3(o1, wk2_ref)
        sc2, bi2 = bn_fold(o2, g2_ref[...], b2_ref[...])
        out_ref[...] = jnp.maximum(o2 * sc2 + bi2 + x, 0.0)

    return kernel


def _banded_conv_weights(w, W):
    """HWIO (3,3,Cin,Cout) -> (3, W*Cin, W*Cout) block-banded matmul weights.

    WK[ky][xin*Cin + ci, xo*Cout + co] = w[ky, xin - xo + 1, ci, co] when
    0 <= xin - xo + 1 < 3, else 0.  Columns that would fall outside [0, W)
    simply have no entry, which realises the conv's zero padding along W.
    """
    _, _, Cin, Cout = w.shape
    xin = jnp.arange(W)[None, :, None]
    xo = jnp.arange(W)[None, None, :]
    kx = jnp.arange(3)[:, None, None]
    sel = (xin == xo + kx - 1).astype(w.dtype)                    # (3, W, W)
    wk = jnp.einsum('kio,ykcd->yicod', sel, w)                    # (3,W,Cin,W,Cout)
    return wk.reshape(3, W * Cin, W * Cout)


def _channel_agg_matrix(W, C):
    """(W*C, W*C) matrix: sums each channel over its W lane-group and
    broadcasts the total back to every lane of that channel."""
    lane = jnp.arange(W * C)
    return (lane[:, None] % C == lane[None, :] % C).astype(jnp.float32)


def identity_block_2(x_nchw, w1, g1, b1, w2, g2, b2):
    """x_nchw: (N, C, H, W) float32; conv weights HWIO; stride=1, Cin==Cout."""
    x = jnp.transpose(x_nchw, (0, 2, 3, 1)).astype(jnp.float32)   # NHWC
    N, H, W, Cin = x.shape
    Cout = w1.shape[-1]
    assert Cin == Cout, "identity block requires inplanes == outplanes"

    L = W * Cin
    x2d = x.reshape(N * H, L)                                     # lane-dense slab

    wk1 = _banded_conv_weights(w1.astype(jnp.float32), W)
    wk2 = _banded_conv_weights(w2.astype(jnp.float32), W)
    aggm = _channel_agg_matrix(W, Cin)

    def lane_tiled(v):        # (C,) -> (1, W*C); lane index = x*C + c
        return jnp.tile(v.astype(jnp.float32), W).reshape(1, L)

    out2d = pl.pallas_call(
        _make_kernel(N, H, W, Cin),
        out_shape=jax.ShapeDtypeStruct((N * H, L), jnp.float32),
        in_specs=[pl.BlockSpec(memory_space=pltpu.MemorySpace.VMEM)] * 8,
        out_specs=pl.BlockSpec(memory_space=pltpu.MemorySpace.VMEM),
    )(x2d, wk1, wk2, aggm,
      lane_tiled(g1), lane_tiled(b1), lane_tiled(g2), lane_tiled(b2))

    out = out2d.reshape(N, H, W, Cout)
    return jnp.transpose(out, (0, 3, 1, 2))                       # back to NCHW


def reference_forward(x_nchw, w1, g1, b1, w2, g2, b2):
    """Pure-JAX reference (same semantics) for verification."""
    x = jnp.transpose(x_nchw, (0, 2, 3, 1))

    def conv(a, w):
        return lax.conv_general_dilated(
            a, w, window_strides=(1, 1), padding=((1, 1), (1, 1)),
            dimension_numbers=('NHWC', 'HWIO', 'NHWC'))

    def bn(a, g, b):
        m = jnp.mean(a, axis=(0, 1, 2))
        v = jnp.mean((a - m) ** 2, axis=(0, 1, 2))
        return (a - m) * lax.rsqrt(v + EPS) * g + b

    out = jax.nn.relu(bn(conv(x, w1), g1, b1))
    out = bn(conv(out, w2), g2, b2) + x
    out = jax.nn.relu(out)
    return jnp.transpose(out, (0, 3, 1, 2))


if __name__ == "__main__":
    # Small shapes consistent with the module: inplanes = outplanes = 8,
    # batch = 2, spatial = 16, stride = 1  (W*C = 128 -> exact lane density).
    N, C, H, W = 2, 8, 16, 16

    key = jax.random.PRNGKey(0)
    kx, k1, k2, k3, k4, k5, k6 = jax.random.split(key, 7)

    x = jax.random.normal(kx, (N, C, H, W), jnp.float32)
    # conv weights in HWIO (3, 3, Cin, Cout)
    w1 = 0.1 * jax.random.normal(k1, (3, 3, C, C), jnp.float32)
    w2 = 0.1 * jax.random.normal(k2, (3, 3, C, C), jnp.float32)
    # BN affine params (deterministic, non-trivial)
    g1 = 1.0 + 0.1 * jax.random.normal(k3, (C,), jnp.float32)
    b1 = 0.1 * jax.random.normal(k4, (C,), jnp.float32)
    g2 = 1.0 + 0.1 * jax.random.normal(k5, (C,), jnp.float32)
    b2 = 0.1 * jax.random.normal(k6, (C,), jnp.float32)

    out = identity_block_2(x, w1, g1, b1, w2, g2, b2)
    out = jax.block_until_ready(out)

    ref = jax.block_until_ready(reference_forward(x, w1, g1, b1, w2, g2, b2))

    assert out.shape == (N, C, H, W)
    max_diff = float(jnp.max(jnp.abs(out - ref)))
    if not np.allclose(np.asarray(out), np.asarray(ref), atol=1e-2, rtol=1e-2):
        raise AssertionError(f"mismatch vs reference, max |diff| = {max_diff}")

    print("KERNEL_OK")
</pallas_src>

<mosaic_0001>
module attributes {stable_mosaic.version = 11 : i64} {
  func.func @kernel(%arg0: memref<32x128xf32, #tpu.memory_space<vmem>>, %arg1: memref<3x128x128xf32, #tpu.memory_space<vmem>>, %arg2: memref<3x128x128xf32, #tpu.memory_space<vmem>>, %arg3: memref<128x128xf32, #tpu.memory_space<vmem>>, %arg4: memref<1x128xf32, #tpu.memory_space<vmem>>, %arg5: memref<1x128xf32, #tpu.memory_space<vmem>>, %arg6: memref<1x128xf32, #tpu.memory_space<vmem>>, %arg7: memref<1x128xf32, #tpu.memory_space<vmem>>, %arg8: memref<32x128xf32, #tpu.memory_space<vmem>>) attributes {dimension_semantics = [], scalar_prefetch = 0 : i64, scratch_operands = 0 : i64, tpu.core_type = #tpu.core_type<tc>} {
    %c0 = arith.constant 0 : index
    %c0_0 = arith.constant 0 : index
    %0 = vector.load %arg0[%c0, %c0_0] : memref<32x128xf32, #tpu.memory_space<vmem>>, vector<32x128xf32>
    %1 = tpu.iota {dimensions = array<i32: 1>} : vector<2x16x128xi32>
    %2 = vector.shape_cast %1 : vector<2x16x128xi32> to vector<32x128xi32>
    %c0_i32 = arith.constant 0 : i32
    %3 = vector.broadcast %c0_i32 : i32 to vector<32x128xi32>
    %4 = arith.cmpi eq, %2, %3 : vector<32x128xi32>
    %c15_i32 = arith.constant 15 : i32
    %5 = vector.broadcast %c15_i32 : i32 to vector<32x128xi32>
    %6 = arith.cmpi eq, %2, %5 : vector<32x128xi32>
    %c1_i32 = arith.constant 1 : i32
    %7 = tpu.dynamic_rotate %0 by %c1_i32 dim 0 : vector<32x128xf32>, i32 -> vector<32x128xf32>
    %c31_i32 = arith.constant 31 : i32
    %8 = tpu.dynamic_rotate %0 by %c31_i32 dim 0 : vector<32x128xf32>, i32 -> vector<32x128xf32>
    %cst = arith.constant 0.000000e+00 : f32
    %9 = vector.broadcast %cst : f32 to vector<32x128xf32>
    %10 = arith.select %4, %9, %7 : vector<32x128xi1>, vector<32x128xf32>
    %cst_1 = arith.constant 0.000000e+00 : f32
    %11 = vector.broadcast %cst_1 : f32 to vector<32x128xf32>
    %12 = arith.select %6, %11, %8 : vector<32x128xi1>, vector<32x128xf32>
    %c0_2 = arith.constant 0 : index
    %c0_3 = arith.constant 0 : index
    %c0_4 = arith.constant 0 : index
    %13 = vector.load %arg1[%c0_2, %c0_3, %c0_4] : memref<3x128x128xf32, #tpu.memory_space<vmem>>, vector<1x128x128xf32>
    %14 = vector.shape_cast %13 : vector<1x128x128xf32> to vector<128x128xf32>
    %cst_5 = arith.constant dense<0.000000e+00> : vector<32x128xf32>
    %15 = tpu.matmul %10, %14, %cst_5 {dimension_numbers = #tpu.dot_dimension_numbers<[1], [0], [0], [1], [0, 0, 1, 1], [], []>} : vector<32x128xf32>, vector<128x128xf32>, vector<32x128xf32> -> vector<32x128xf32>
    %c1 = arith.constant 1 : index
    %c0_6 = arith.constant 0 : index
    %c0_7 = arith.constant 0 : index
    %16 = vector.load %arg1[%c1, %c0_6, %c0_7] : memref<3x128x128xf32, #tpu.memory_space<vmem>>, vector<1x128x128xf32>
    %17 = vector.shape_cast %16 : vector<1x128x128xf32> to vector<128x128xf32>
    %cst_8 = arith.constant dense<0.000000e+00> : vector<32x128xf32>
    %18 = tpu.matmul %0, %17, %cst_8 {dimension_numbers = #tpu.dot_dimension_numbers<[1], [0], [0], [1], [0, 0, 1, 1], [], []>} : vector<32x128xf32>, vector<128x128xf32>, vector<32x128xf32> -> vector<32x128xf32>
    %19 = arith.addf %15, %18 : vector<32x128xf32>
    %c2 = arith.constant 2 : index
    %c0_9 = arith.constant 0 : index
    %c0_10 = arith.constant 0 : index
    %20 = vector.load %arg1[%c2, %c0_9, %c0_10] : memref<3x128x128xf32, #tpu.memory_space<vmem>>, vector<1x128x128xf32>
    %21 = vector.shape_cast %20 : vector<1x128x128xf32> to vector<128x128xf32>
    %cst_11 = arith.constant dense<0.000000e+00> : vector<32x128xf32>
    %22 = tpu.matmul %12, %21, %cst_11 {dimension_numbers = #tpu.dot_dimension_numbers<[1], [0], [0], [1], [0, 0, 1, 1], [], []>} : vector<32x128xf32>, vector<128x128xf32>, vector<32x128xf32> -> vector<32x128xf32>
    %23 = arith.addf %19, %22 : vector<32x128xf32>
    %c0_12 = arith.constant 0 : index
    %c0_13 = arith.constant 0 : index
    %24 = vector.load %arg4[%c0_12, %c0_13] : memref<1x128xf32, #tpu.memory_space<vmem>>, vector<1x128xf32>
    %c0_14 = arith.constant 0 : index
    %c0_15 = arith.constant 0 : index
    %25 = vector.load %arg5[%c0_14, %c0_15] : memref<1x128xf32, #tpu.memory_space<vmem>>, vector<1x128xf32>
    %cst_16 = arith.constant dense<0.000000e+00> : vector<128xf32>
    %26 = vector.multi_reduction <add>, %23, %cst_16 [0] : vector<32x128xf32> to vector<128xf32>
    %27 = vector.shape_cast %26 : vector<128xf32> to vector<1x128xf32>
    %28 = arith.mulf %23, %23 : vector<32x128xf32>
    %cst_17 = arith.constant dense<0.000000e+00> : vector<128xf32>
    %29 = vector.multi_reduction <add>, %28, %cst_17 [0] : vector<32x128xf32> to vector<128xf32>
    %30 = vector.shape_cast %29 : vector<128xf32> to vector<1x128xf32>
    %31 = tpu.concatenate %27, %30 in 0 : vector<1x128xf32>, vector<1x128xf32> -> vector<2x128xf32>
    %c0_18 = arith.constant 0 : index
    %c0_19 = arith.constant 0 : index
    %32 = vector.load %arg3[%c0_18, %c0_19] : memref<128x128xf32, #tpu.memory_space<vmem>>, vector<128x128xf32>
    %cst_20 = arith.constant dense<0.000000e+00> : vector<2x128xf32>
    %33 = tpu.matmul %31, %32, %cst_20 {dimension_numbers = #tpu.dot_dimension_numbers<[1], [0], [0], [1], [0, 0, 1, 1], [], []>} : vector<2x128xf32>, vector<128x128xf32>, vector<2x128xf32> -> vector<2x128xf32>
    %cst_21 = arith.constant 0.001953125 : f32
    %34 = vector.broadcast %cst_21 : f32 to vector<2x128xf32>
    %35 = arith.mulf %33, %34 : vector<2x128xf32>
    %36 = vector.extract_strided_slice %35 {offsets = [0, 0], sizes = [1, 128], strides = [1, 1]} : vector<2x128xf32> to vector<1x128xf32>
    %37 = vector.extract_strided_slice %35 {offsets = [1, 0], sizes = [1, 128], strides = [1, 1]} : vector<2x128xf32> to vector<1x128xf32>
    %38 = arith.mulf %36, %36 : vector<1x128xf32>
    %39 = arith.subf %37, %38 : vector<1x128xf32>
    %cst_22 = arith.constant 9.99999974E-6 : f32
    %40 = vector.broadcast %cst_22 : f32 to vector<1x128xf32>
    %41 = arith.addf %39, %40 : vector<1x128xf32>
    %42 = math.rsqrt %41 : vector<1x128xf32>
    %43 = arith.mulf %24, %42 : vector<1x128xf32>
    %44 = arith.mulf %36, %43 : vector<1x128xf32>
    %45 = arith.subf %25, %44 : vector<1x128xf32>
    %46 = vector.broadcast %43 : vector<1x128xf32> to vector<32x128xf32>
    %47 = arith.mulf %23, %46 : vector<32x128xf32>
    %48 = vector.broadcast %45 : vector<1x128xf32> to vector<32x128xf32>
    %49 = arith.addf %47, %48 : vector<32x128xf32>
    %cst_23 = arith.constant 0.000000e+00 : f32
    %50 = vector.broadcast %cst_23 : f32 to vector<32x128xf32>
    %51 = arith.maximumf %49, %50 : vector<32x128xf32>
    %c1_i32_24 = arith.constant 1 : i32
    %52 = tpu.dynamic_rotate %51 by %c1_i32_24 dim 0 : vector<32x128xf32>, i32 -> vector<32x128xf32>
    %c31_i32_25 = arith.constant 31 : i32
    %53 = tpu.dynamic_rotate %51 by %c31_i32_25 dim 0 : vector<32x128xf32>, i32 -> vector<32x128xf32>
    %cst_26 = arith.constant 0.000000e+00 : f32
    %54 = vector.broadcast %cst_26 : f32 to vector<32x128xf32>
    %55 = arith.select %4, %54, %52 : vector<32x128xi1>, vector<32x128xf32>
    %cst_27 = arith.constant 0.000000e+00 : f32
    %56 = vector.broadcast %cst_27 : f32 to vector<32x128xf32>
    %57 = arith.select %6, %56, %53 : vector<32x128xi1>, vector<32x128xf32>
    %c0_28 = arith.constant 0 : index
    %c0_29 = arith.constant 0 : index
    %c0_30 = arith.constant 0 : index
    %58 = vector.load %arg2[%c0_28, %c0_29, %c0_30] : memref<3x128x128xf32, #tpu.memory_space<vmem>>, vector<1x128x128xf32>
    %59 = vector.shape_cast %58 : vector<1x128x128xf32> to vector<128x128xf32>
    %cst_31 = arith.constant dense<0.000000e+00> : vector<32x128xf32>
    %60 = tpu.matmul %55, %59, %cst_31 {dimension_numbers = #tpu.dot_dimension_numbers<[1], [0], [0], [1], [0, 0, 1, 1], [], []>} : vector<32x128xf32>, vector<128x128xf32>, vector<32x128xf32> -> vector<32x128xf32>
    %c1_32 = arith.constant 1 : index
    %c0_33 = arith.constant 0 : index
    %c0_34 = arith.constant 0 : index
    %61 = vector.load %arg2[%c1_32, %c0_33, %c0_34] : memref<3x128x128xf32, #tpu.memory_space<vmem>>, vector<1x128x128xf32>
    %62 = vector.shape_cast %61 : vector<1x128x128xf32> to vector<128x128xf32>
    %cst_35 = arith.constant dense<0.000000e+00> : vector<32x128xf32>
    %63 = tpu.matmul %51, %62, %cst_35 {dimension_numbers = #tpu.dot_dimension_numbers<[1], [0], [0], [1], [0, 0, 1, 1], [], []>} : vector<32x128xf32>, vector<128x128xf32>, vector<32x128xf32> -> vector<32x128xf32>
    %64 = arith.addf %60, %63 : vector<32x128xf32>
    %c2_36 = arith.constant 2 : index
    %c0_37 = arith.constant 0 : index
    %c0_38 = arith.constant 0 : index
    %65 = vector.load %arg2[%c2_36, %c0_37, %c0_38] : memref<3x128x128xf32, #tpu.memory_space<vmem>>, vector<1x128x128xf32>
    %66 = vector.shape_cast %65 : vector<1x128x128xf32> to vector<128x128xf32>
    %cst_39 = arith.constant dense<0.000000e+00> : vector<32x128xf32>
    %67 = tpu.matmul %57, %66, %cst_39 {dimension_numbers = #tpu.dot_dimension_numbers<[1], [0], [0], [1], [0, 0, 1, 1], [], []>} : vector<32x128xf32>, vector<128x128xf32>, vector<32x128xf32> -> vector<32x128xf32>
    %68 = arith.addf %64, %67 : vector<32x128xf32>
    %c0_40 = arith.constant 0 : index
    %c0_41 = arith.constant 0 : index
    %69 = vector.load %arg6[%c0_40, %c0_41] : memref<1x128xf32, #tpu.memory_space<vmem>>, vector<1x128xf32>
    %c0_42 = arith.constant 0 : index
    %c0_43 = arith.constant 0 : index
    %70 = vector.load %arg7[%c0_42, %c0_43] : memref<1x128xf32, #tpu.memory_space<vmem>>, vector<1x128xf32>
    %cst_44 = arith.constant dense<0.000000e+00> : vector<128xf32>
    %71 = vector.multi_reduction <add>, %68, %cst_44 [0] : vector<32x128xf32> to vector<128xf32>
    %72 = vector.shape_cast %71 : vector<128xf32> to vector<1x128xf32>
    %73 = arith.mulf %68, %68 : vector<32x128xf32>
    %cst_45 = arith.constant dense<0.000000e+00> : vector<128xf32>
    %74 = vector.multi_reduction <add>, %73, %cst_45 [0] : vector<32x128xf32> to vector<128xf32>
    %75 = vector.shape_cast %74 : vector<128xf32> to vector<1x128xf32>
    %76 = tpu.concatenate %72, %75 in 0 : vector<1x128xf32>, vector<1x128xf32> -> vector<2x128xf32>
    %c0_46 = arith.constant 0 : index
    %c0_47 = arith.constant 0 : index
    %77 = vector.load %arg3[%c0_46, %c0_47] : memref<128x128xf32, #tpu.memory_space<vmem>>, vector<128x128xf32>
    %cst_48 = arith.constant dense<0.000000e+00> : vector<2x128xf32>
    %78 = tpu.matmul %76, %77, %cst_48 {dimension_numbers = #tpu.dot_dimension_numbers<[1], [0], [0], [1], [0, 0, 1, 1], [], []>} : vector<2x128xf32>, vector<128x128xf32>, vector<2x128xf32> -> vector<2x128xf32>
    %cst_49 = arith.constant 0.001953125 : f32
    %79 = vector.broadcast %cst_49 : f32 to vector<2x128xf32>
    %80 = arith.mulf %78, %79 : vector<2x128xf32>
    %81 = vector.extract_strided_slice %80 {offsets = [0, 0], sizes = [1, 128], strides = [1, 1]} : vector<2x128xf32> to vector<1x128xf32>
    %82 = vector.extract_strided_slice %80 {offsets = [1, 0], sizes = [1, 128], strides = [1, 1]} : vector<2x128xf32> to vector<1x128xf32>
    %83 = arith.mulf %81, %81 : vector<1x128xf32>
    %84 = arith.subf %82, %83 : vector<1x128xf32>
    %cst_50 = arith.constant 9.99999974E-6 : f32
    %85 = vector.broadcast %cst_50 : f32 to vector<1x128xf32>
    %86 = arith.addf %84, %85 : vector<1x128xf32>
    %87 = math.rsqrt %86 : vector<1x128xf32>
    %88 = arith.mulf %69, %87 : vector<1x128xf32>
    %89 = arith.mulf %81, %88 : vector<1x128xf32>
    %90 = arith.subf %70, %89 : vector<1x128xf32>
    %91 = vector.broadcast %88 : vector<1x128xf32> to vector<32x128xf32>
    %92 = arith.mulf %68, %91 : vector<32x128xf32>
    %93 = vector.broadcast %90 : vector<1x128xf32> to vector<32x128xf32>
    %94 = arith.addf %92, %93 : vector<32x128xf32>
    %95 = arith.addf %94, %0 : vector<32x128xf32>
    %cst_51 = arith.constant 0.000000e+00 : f32
    %96 = vector.broadcast %cst_51 : f32 to vector<32x128xf32>
    %97 = arith.maximumf %95, %96 : vector<32x128xf32>
    %c0_52 = arith.constant 0 : index
    %c0_53 = arith.constant 0 : index
    %98 = vector.load %arg8[%c0_52, %c0_53] : memref<32x128xf32, #tpu.memory_space<vmem>>, vector<32x128xf32>
    tpu.vector_store %arg8[%c0_52, %c0_53], %97 {strides = array<i32>} : memref<32x128xf32, #tpu.memory_space<vmem>>, vector<32x128xf32>,
    return
  }
}

</mosaic_0001>

<bundles_post_ra>
// kernel: tpu_custom_call.1
= control target key start
LH: loop header
LB: loop body
LE: loop exit
PB: predicated region body
PF: predicated region fallthrough
CT: control target
= control target key end

     0   :  { %13 = vsyncpa [#allocation3], 0  ;;  %s2044_s0 = inlined_call_operand.hbm [shape: f32[32,128], index: 0, kind: input, shape index: {}]   ;;  %s2045_s1 = inlined_call_operand.hbm [shape: f32[3,128,128], index: 1, kind: input, shape index: {}]   ;;  %s2046_s2 = inlined_call_operand.hbm [shape: f32[3,128,128], index: 2, kind: input, shape index: {}]   ;;  %s2047_s3 = inlined_call_operand.hbm [shape: f32[128,128], index: 3, kind: input, shape index: {}]   ;;  %s2048_s4 = inlined_call_operand.vmem [shape: f32[1,128], index: 4, kind: input, shape index: {}]   ;;  %s2049_s5 = inlined_call_operand.vmem [shape: f32[1,128], index: 5, kind: input, shape index: {}]   ;;  %s2050_s6 = inlined_call_operand.vmem [shape: f32[1,128], index: 6, kind: input, shape index: {}]   ;;  %s2051_s7 = inlined_call_operand.vmem [shape: f32[1,128], index: 7, kind: input, shape index: {}]   ;;  %s2052_s8 = inlined_call_operand.hbm [shape: f32[32,128], index: 8, kind: output, shape index: {}]  }
   0x1   :  { %14 = vsyncpa [#allocation6], 0 }
   0x2   :  { %15 = vsyncpa [#allocation9], 0 }
   0x3   :  { %16 = vsyncpa [#allocation4], 0  ;;  %s1697_s27 = smov [#allocation5]   ;;  %s1698_s29 = smov [#allocation2]  }
   0x4   :  { %s34_s28 = sshll.u32 %s1697_s27, 4  ;;  %s22_s30 = sshll.u32 %s1698_s29, 4  ;;  %s35_s28 = int_to_ptr.vmem [resolvable:$true] %s34_s28  ;;  %s23_s30 = int_to_ptr.vmem [resolvable:$true] %s22_s30 }
   0x5   :  { %s1597_s9 = scalar_lea.vmem %s35_s28, 6144  ;;  %p1602_p1 = scmp.lt.s32.totalorder %s35_s28, %s35_s28 }
   0x6   :  { %p1598_p0 = scmp.ne.s32.totalorder %s35_s28, %s1597_s9  ;;  %p1603_p2 = scmp.lt.s32.totalorder %s1597_s9, %s1597_s9 }
   0x8   :  { %p1604_p3 = por %p1603_p2, %p1602_p1 }
   0xa   :  { %p1605_p4 = pnand %p1604_p3, %p1598_p0 }
   0xc   :  { %1608 = shalt.err (!%p1605_p4)
}
   0xd   :  { %s1699_s10 = smov 128   ;;  %s1700_s11 = smov 8  }
   0xe   :  { %40 = dma.hbm_to_vmem [thread:$0]  %s2045_s1, 6144, %s35_s28, [#allocation6], %s1699_s10, %s1699_s10, %s1700_s11  }
   0xf   :  { %s1617_s14 = scalar_lea.vmem %s23_s30, 512  ;;  %p1622_p6 = scmp.lt.s32.totalorder %s23_s30, %s23_s30 }
  0x10   :  { %p1618_p5 = scmp.ne.s32.totalorder %s23_s30, %s1617_s14  ;;  %p1623_p7 = scmp.lt.s32.totalorder %s1617_s14, %s1617_s14 }
  0x12   :  { %p1624_p8 = por %p1623_p7, %p1622_p6 }
  0x14   :  { %p1625_p9 = pnand %p1624_p8, %p1618_p5 }
  0x16   :  { %1628 = shalt.err (!%p1625_p9)
}
  0x17   :  { %28 = dma.hbm_to_vmem [thread:$0]  %s2044_s0, 512, %s23_s30, [#allocation3], %s1699_s10, %s1699_s10, %s1700_s11  }
  0x18   :  { %s1701_s17 = smov [#allocation7]   ;;  %s1702_s19 = smov [#allocation8]  }
  0x19   :  { %s46_s18 = sshll.u32 %s1701_s17, 4  ;;  %s58_s20 = sshll.u32 %s1702_s19, 4  ;;  %s47_s18 = int_to_ptr.vmem [resolvable:$true] %s46_s18  ;;  %s59_s20 = int_to_ptr.vmem [resolvable:$true] %s58_s20 }
  0x1a   :  { %s1637_s1 = scalar_lea.vmem %s47_s18, 6144  ;;  %p1642_p11 = scmp.lt.s32.totalorder %s47_s18, %s47_s18 }
  0x1b   :  { %p1638_p10 = scmp.ne.s32.totalorder %s47_s18, %s1637_s1  ;;  %p1643_p12 = scmp.lt.s32.totalorder %s1637_s1, %s1637_s1 }
  0x1d   :  { %p1644_p13 = por %p1643_p12, %p1642_p11 }
  0x1f   :  { %p1645_p0 = pnand %p1644_p13, %p1638_p10 }
  0x21   :  { %1648 = shalt.err (!%p1645_p0)
}
  0x22   :  { %52 = dma.hbm_to_vmem [thread:$0]  %s2046_s2, 6144, %s47_s18, [#allocation6], %s1699_s10, %s1699_s10, %s1700_s11  }
  0x23   :  { %s1657_s0 = scalar_lea.vmem %s59_s20, 2048  ;;  %p1662_p2 = scmp.lt.s32.totalorder %s59_s20, %s59_s20 }
  0x24   :  { %p1658_p1 = scmp.ne.s32.totalorder %s59_s20, %s1657_s0  ;;  %p1663_p3 = scmp.lt.s32.totalorder %s1657_s0, %s1657_s0 }
  0x26   :  { %p1664_p4 = por %p1663_p3, %p1662_p2 }
  0x28   :  { %p1665_p5 = pnand %p1664_p4, %p1658_p1 }
  0x2a   :  { %1668 = shalt.err (!%p1665_p5)
}
  0x2b   :  { %64 = dma.hbm_to_vmem [thread:$0]  %s2047_s3, 2048, %s59_s20, [#allocation9], %s1699_s10, %s1699_s10, %s1700_s11  }
  0x2c   :  { %1689 = dma.done.wait [#allocation3], 512  }
  0x2d   :  { %1690 = vsyncadd [#allocation3], 4294966784 }
  0x2e   :  { %1691 = dma.done.wait [#allocation6], 12288  }
  0x2f   :  { %1692 = vsyncadd [#allocation6], 4294955008 }
  0x30   :  { %1693 = dma.done.wait [#allocation9], 2048  }
  0x31   :  { %1694 = vsyncadd [#allocation9], 4294965248  ;;  %v154_v0 = vld [vmem:[#allocation5 + $0xf8] sm:$0xff]  ;;  %v153_v2 = vld [vmem:[#allocation5 + $0xf0] sm:$0xff]  ;;  %v89_v22 = vlaneseq  ;;  %vm1704_vm4 = vmmov 0   ;;  %vm455_vm5 = vcmask 1040384  }
  0x32   :  { %v137_v1 = vld [vmem:[#allocation5 + $0x78] sm:$0xff]  ;;  %1274 = vmatprep.subr.mxu0 %v154_v0  ;;  %v136_v3 = vld [vmem:[#allocation5 + $0x70] sm:$0xff]  ;;  %v152_v4 = vld [vmem:[#allocation5 + $0xe8] sm:$0xff] }
  0x33   :  { %1312 = vmatprep.subr.mxu1 %v137_v1  ;;  %1275 = vmatpush3.msra.mxu0 %v154_v0  ;;  %v135_v5 = vld [vmem:[#allocation5 + $0x68] sm:$0xff]  ;;  %v151_v6 = vld [vmem:[#allocation5 + $0xe0] sm:$0xff]  ;;  %v150_v8 = vld [vmem:[#allocation5 + $0xd8] sm:$0xff]  ;;  %v1780_v29 = vshrl.u32 %v89_v22, 7 }
  0x34   :  { %1313 = vmatpush3.msra.mxu1 %v137_v1  ;;  %1276 = vmatprep.subr.mxu0 %v153_v2  ;;  %v134_v7 = vld [vmem:[#allocation5 + $0x60] sm:$0xff]  ;;  %v133_v9 = vld [vmem:[#allocation5 + $0x58] sm:$0xff]  ;;  %v149_v10 = vld [vmem:[#allocation5 + $0xd0] sm:$0xff] }
  0x35   :  { %1314 = vmatprep.subr.mxu1 %v136_v3  ;;  %1277 = vmatpush3.msra.mxu0 %v153_v2  ;;  %v132_v11 = vld [vmem:[#allocation5 + $0x50] sm:$0xff]  ;;  %v148_v12 = vld [vmem:[#allocation5 + $0xc8] sm:$0xff]  ;;  %v147_v14 = vld [vmem:[#allocation5 + $0xc0] sm:$0xff]  ;;  %vm100_vm0 = vcmp.lt.s32.totalorder %v1780_v29, 1  ;;  %vm1118_vm1 = vcmp.ne.s32.totalorder %v1780_v29, 0  ;;  %vm109_vm2 = vcmp.lt.s32.totalorder %v1780_v29, 7 }
  0x36   :  { %1315 = vmatpush3.msra.mxu1 %v136_v3  ;;  %1278 = vmatprep.subr.mxu0 %v152_v4  ;;  %v131_v13 = vld [vmem:[#allocation5 + $0x48] sm:$0xff]  ;;  %v130_v15 = vld [vmem:[#allocation5 + $0x40] sm:$0xff]  ;;  %v146_v16 = vld [vmem:[#allocation5 + $0xb8] sm:$0xff]  ;;  %v1817_v1 = vadd.s32 8, %v1780_v29 }
  0x37   :  { %1316 = vmatprep.subr.mxu1 %v135_v5  ;;  %1279 = vmatpush3.msra.mxu0 %v152_v4  ;;  %v129_v17 = vld [vmem:[#allocation5 + $0x38] sm:$0xff]  ;;  %v145_v18 = vld [vmem:[#allocation5 + $0xb0] sm:$0xff]  ;;  %v144_v20 = vld [vmem:[#allocation5 + $0xa8] sm:$0xff] }
  0x38   :  { %1317 = vmatpush3.msra.mxu1 %v135_v5  ;;  %1280 = vmatprep.subr.mxu0 %v151_v6  ;;  %v128_v19 = vld [vmem:[#allocation5 + $0x30] sm:$0xff]  ;;  %v127_v21 = vld [vmem:[#allocation5 + $0x28] sm:$0xff]  ;;  %v143_v23 = vld [vmem:[#allocation5 + $0xa0] sm:$0xff]  ;;  %vm1119_vm3 = vcmp.ne.s32.totalorder %v1817_v1, 15 }
  0x39   :  { %1318 = vmatprep.subr.mxu1 %v134_v7  ;;  %1281 = vmatpush3.msra.mxu0 %v151_v6  ;;  %v126_v24 = vld [vmem:[#allocation5 + $0x20] sm:$0xff]  ;;  %v142_v25 = vld [vmem:[#allocation5 + $0x98] sm:$0xff]  ;;  %v141_v30 = vld [vmem:[#allocation5 + $0x90] sm:$0xff] }
  0x3a   :  { %1319 = vmatpush3.msra.mxu1 %v134_v7  ;;  %1282 = vmatprep.subr.mxu0 %v150_v8  ;;  %v125_v26 = vld [vmem:[#allocation5 + $0x18] sm:$0xff]  ;;  %v1776_v27 = vld [vmem:[#allocation2] sm:$0xff]  ;;  %v124_v31 = vld [vmem:[#allocation5 + $0x10] sm:$0xff] }
  0x3b   :  { %1320 = vmatprep.subr.mxu1 %v133_v9  ;;  %1283 = vmatpush3.msra.mxu0 %v150_v8  ;;  %v1778_v28 = vld [vmem:[#allocation2 + $0x18] sm:$0xff]  ;;  %v1782_v32 = vld [vmem:[#allocation2 + $0x8] sm:$0xff]  ;;  %v96_v35 = vrot.slane %v1776_v27, 7  ;;  %v1786_v37 = vld [vmem:[#allocation2 + $0x10] sm:$0xff]  ;;  %v105_v46 = vrot.slane %v1776_v27, 1  ;;  %v1703_v8 = vmov 0.0  }
  0x3c   :  { %1321 = vmatpush3.msra.mxu1 %v133_v9  ;;  %1284 = vmatprep.subr.mxu0 %v149_v10  ;;  %v140_v33 = vld [vmem:[#allocation5 + $0x88] sm:$0xff]  ;;  %v99_v36 = vrot.slane %v1778_v28, 7  ;;  %v97_v38 = vrot.slane %v1782_v32, 7  ;;  %v139_v39 = vld [vmem:[#allocation5 + $0x80] sm:$0xff]  ;;  %v98_v41 = vrot.slane %v1786_v37, 7  ;;  %v341_v44 = vld [vmem:[#allocation5 + $0x178] sm:$0xff] }
  0x3d   :  { %1322 = vmatprep.subr.mxu1 %v132_v11  ;;  %1285 = vmatpush3.msra.mxu0 %v149_v10  ;;  %v123_v34 = vld [vmem:[#allocation5 + $0x8] sm:$0xff]  ;;  %v122_v40 = vld [vmem:[#allocation5] sm:$0xff]  ;;  %v106_v47 = vrot.slane %v1782_v32, 1  ;;  %v340_v48 = vld [vmem:[#allocation5 + $0x170] sm:$0xff]  ;;  %v107_v63 = vrot.slane %v1786_v37, 1  ;;  %v108_v2 = vrot.slane %v1778_v28, 1 }
  0x3e   :  { %1323 = vmatpush3.msra.mxu1 %v132_v11  ;;  %1286 = vmatprep.subr.mxu0 %v148_v12  ;;  %v104_v42 = vsel %vm100_vm0, %v99_v36, %v96_v35  ;;  %v103_v43 = vsel %vm100_vm0, %v96_v35, %v97_v38  ;;  %v102_v45 = vsel %vm100_vm0, %v97_v38, %v98_v41  ;;  %v339_v50 = vld [vmem:[#allocation5 + $0x168] sm:$0xff]  ;;  %v338_v52 = vld [vmem:[#allocation5 + $0x160] sm:$0xff]  ;;  %v337_v53 = vld [vmem:[#allocation5 + $0x158] sm:$0xff] }
  0x3f   :  { %1324 = vmatprep.subr.mxu1 %v131_v13  ;;  %1287 = vmatpush3.msra.mxu0 %v148_v12  ;;  %v101_v49 = vsel %vm100_vm0, %v98_v41, %v99_v36  ;;  %v112_v51 = vsel %vm109_vm2, %v105_v46, %v106_v47  ;;  %v336_v54 = vld [vmem:[#allocation5 + $0x150] sm:$0xff]  ;;  %v335_v55 = vld [vmem:[#allocation5 + $0x148] sm:$0xff]  ;;  %v334_v56 = vld [vmem:[#allocation5 + $0x140] sm:$0xff]  ;;  %v111_v4 = vsel %vm109_vm2, %v106_v47, %v107_v63 }
  0x40   :  { %1325 = vmatpush3.msra.mxu1 %v131_v13  ;;  %1288 = vmatprep.subr.mxu0 %v147_v14  ;;  %v333_v57 = vld [vmem:[#allocation5 + $0x138] sm:$0xff]  ;;  %v332_v58 = vld [vmem:[#allocation5 + $0x130] sm:$0xff]  ;;  %v331_v59 = vld [vmem:[#allocation5 + $0x128] sm:$0xff]  ;;  %v110_v5 = vsel %vm109_vm2, %v107_v63, %v108_v2  ;;  %v113_v6 = vsel %vm109_vm2, %v108_v2, %v105_v46 }
  0x41   :  { %1326 = vmatprep.subr.mxu1 %v130_v15  ;;  %1289 = vmatpush3.msra.mxu0 %v147_v14  ;;  %v330_v60 = vld [vmem:[#allocation5 + $0x120] sm:$0xff]  ;;  %v329_v61 = vld [vmem:[#allocation5 + $0x118] sm:$0xff]  ;;  %v328_v62 = vld [vmem:[#allocation5 + $0x110] sm:$0xff] }
  0x42   :  { %1327 = vmatpush3.msra.mxu1 %v130_v15  ;;  %1290 = vmatprep.subr.mxu0 %v146_v16  ;;  %v327_v0 = vld [vmem:[#allocation5 + $0x108] sm:$0xff]  ;;  %v326_v3 = vld [vmem:[#allocation5 + $0x100] sm:$0xff]  ;;  %v1833_v7 = vld [vmem:[#allocation8 + $0x78] sm:$0xff] }
  0x43   :  { %1328 = vmatprep.subr.mxu1 %v129_v17  ;;  %1291 = vmatpush3.msra.mxu0 %v146_v16  ;;  %v1836_v9 = vld [vmem:[#allocation8 + $0x70] sm:$0xff]  ;;  %v1842_v10 = vld [vmem:[#allocation8 + $0x68] sm:$0xff]  ;;  %v1846_v11 = vld [vmem:[#allocation8 + $0x60] sm:$0xff] }
  0x44   :  { %1329 = vmatpush3.msra.mxu1 %v129_v17  ;;  %1292 = vmatprep.subr.mxu0 %v145_v18  ;;  %v1850_v12 = vld [vmem:[#allocation8 + $0x58] sm:$0xff]  ;;  %v1854_v13 = vld [vmem:[#allocation8 + $0x50] sm:$0xff]  ;;  %v1858_v14 = vld [vmem:[#allocation8 + $0x48] sm:$0xff] }
  0x45   :  { %1330 = vmatprep.subr.mxu1 %v128_v19  ;;  %1293 = vmatpush3.msra.mxu0 %v145_v18  ;;  %v1862_v15 = vld [vmem:[#allocation8 + $0x40] sm:$0xff]  ;;  %v1866_v16 = vld [vmem:[#allocation8 + $0x38] sm:$0xff]  ;;  %v1870_v17 = vld [vmem:[#allocation8 + $0x30] sm:$0xff] }
  0x46   :  { %1331 = vmatpush3.msra.mxu1 %v128_v19  ;;  %1294 = vmatprep.subr.mxu0 %v144_v20  ;;  %v1874_v18 = vld [vmem:[#allocation8 + $0x28] sm:$0xff]  ;;  %v1878_v19 = vld [vmem:[#allocation8 + $0x20] sm:$0xff] }
  0x47   :  { %1332 = vmatprep.subr.mxu1 %v127_v21  ;;  %1295 = vmatpush3.msra.mxu0 %v144_v20  ;;  %v1881_v20 = vld [vmem:[#allocation8 + $0x18] sm:$0xff]  ;;  %v1890_v22 = vld [vmem:[#allocation8 + $0x8] sm:$0xff] }
  0x48   :  { %1333 = vmatpush3.msra.mxu1 %v127_v21  ;;  %1296 = vmatprep.subr.mxu0 %v143_v23  ;;  %v1884_v21 = vld [vmem:[#allocation8 + $0x10] sm:$0xff] }
  0x49   :  { %1334 = vmatprep.subr.mxu1 %v126_v24  ;;  %1297 = vmatpush3.msra.mxu0 %v143_v23  ;;  %v1894_v23 = vld [vmem:[#allocation8] sm:$0xff] }
  0x4a   :  { %1335 = vmatpush3.msra.mxu1 %v126_v24  ;;  %1298 = vmatprep.subr.mxu0 %v142_v25 }
  0x4b   :  { %1336 = vmatprep.subr.mxu1 %v125_v26  ;;  %1299 = vmatpush3.msra.mxu0 %v142_v25 }
  0x4c   :  { %1337 = vmatpush3.msra.mxu1 %v125_v26  ;;  %1300 = vmatprep.subr.mxu0 %v141_v30 }
  0x4d   :  { %1338 = vmatprep.subr.mxu1 %v124_v31  ;;  %1301 = vmatpush3.msra.mxu0 %v141_v30 }
  0x4e   :  { %1339 = vmatpush3.msra.mxu1 %v124_v31  ;;  %1302 = vmatprep.subr.mxu0 %v140_v33 }
  0x4f   :  { %1340 = vmatprep.subr.mxu1 %v123_v34  ;;  %1303 = vmatpush3.msra.mxu0 %v140_v33 }
  0x50   :  { %1341 = vmatpush3.msra.mxu1 %v123_v34  ;;  %1304 = vmatprep.subr.mxu0 %v139_v39 }
  0x51   :  { %1342 = vmatprep.subr.mxu1 %v122_v40  ;;  %1305 = vmatpush3.msra.mxu0 %v139_v39 }
  0x52   :  { %1306 = vmatprep.mubr.f32.mxu0 %v1776_v27  ;;  %1343 = vmatpush3.msra.mxu1 %v122_v40 }
  0x53   :  { %1344 = vmatprep.mubr.msk.f32.mxu1 %vm1118_vm1, %v104_v42  ;;  %1307 = vmatmul.mubr.f32.vlgmr.msra.gmra.mxu0 %v1782_v32 }
  0x54   :  { %1345 = vmatmul.mubr.f32.vlgmr.msra.gmra.mxu1 %v103_v43  ;;  %1350 = vmatprep.subr.mxu0 %v341_v44 }
  0x55   :  { %1309 = vmatprep.mubr.f32.mxu0 %v1786_v37  ;;  %1351 = vmatpush3.msra.mxu0 %v341_v44 }
  0x56   :  { %1347 = vmatprep.mubr.msk.f32.mxu1 %vm1118_vm1, %v102_v45  ;;  %1352 = vmatprep.subr.mxu0 %v340_v48 }
  0x57   :  { %1353 = vmatpush3.msra.mxu0 %v340_v48  ;;  %1388 = vmatprep.subr.mxu1 %v1703_v8 }
  0x58   :  { %1348 = vmatmul.mubr.f32.gmra.mxu1 %v101_v49  ;;  %1354 = vmatprep.subr.mxu0 %v339_v50 }
  0x59   :  { %1310 = vmatmul.mubr.f32.gmra.mxu0 %v1778_v28  ;;  %1389 = vmatpush3.msra.mxu1 %v1833_v7 }
  0x5a   :  { %1355 = vmatpush3.msra.mxu0 %v339_v50  ;;  %1382 = vmatprep.mubr.f32.mxu0 %v112_v51 }
  0x5b   :  { %1356 = vmatprep.subr.mxu0 %v338_v52  ;;  %1390 = vmatprep.subr.mxu1 %v1703_v8 }
  0x5c   :  { %1357 = vmatpush3.msra.mxu0 %v338_v52  ;;  %1391 = vmatpush3.msra.mxu1 %v1836_v9 }
  0x5d   :  { %1358 = vmatprep.subr.mxu0 %v337_v53  ;;  %1392 = vmatprep.subr.mxu1 %v1703_v8 }
  0x5e   :  { %1359 = vmatpush3.msra.mxu0 %v337_v53  ;;  %1393 = vmatpush3.msra.mxu1 %v1842_v10 }
  0x5f   :  { %1360 = vmatprep.subr.mxu0 %v336_v54  ;;  %1394 = vmatprep.subr.mxu1 %v1703_v8 }
  0x60   :  { %1361 = vmatpush3.msra.mxu0 %v336_v54  ;;  %1395 = vmatpush3.msra.mxu1 %v1846_v11 }
  0x61   :  { %1362 = vmatprep.subr.mxu0 %v335_v55  ;;  %1396 = vmatprep.subr.mxu1 %v1703_v8 }
  0x62   :  { %1363 = vmatpush3.msra.mxu0 %v335_v55  ;;  %1397 = vmatpush3.msra.mxu1 %v1850_v12 }
  0x63   :  { %1364 = vmatprep.subr.mxu0 %v334_v56  ;;  %1398 = vmatprep.subr.mxu1 %v1703_v8 }
  0x64   :  { %1365 = vmatpush3.msra.mxu0 %v334_v56  ;;  %1399 = vmatpush3.msra.mxu1 %v1854_v13 }
  0x65   :  { %1366 = vmatprep.subr.mxu0 %v333_v57  ;;  %1400 = vmatprep.subr.mxu1 %v1703_v8 }
  0x66   :  { %1367 = vmatpush3.msra.mxu0 %v333_v57  ;;  %1401 = vmatpush3.msra.mxu1 %v1858_v14 }
  0x67   :  { %1368 = vmatprep.subr.mxu0 %v332_v58  ;;  %1402 = vmatprep.subr.mxu1 %v1703_v8 }
  0x68   :  { %1369 = vmatpush3.msra.mxu0 %v332_v58  ;;  %1403 = vmatpush3.msra.mxu1 %v1862_v15 }
  0x69   :  { %1370 = vmatprep.subr.mxu0 %v331_v59  ;;  %1404 = vmatprep.subr.mxu1 %v1703_v8 }
  0x6a   :  { %1371 = vmatpush3.msra.mxu0 %v331_v59  ;;  %1405 = vmatpush3.msra.mxu1 %v1866_v16 }
  0x6b   :  { %1372 = vmatprep.subr.mxu0 %v330_v60  ;;  %1406 = vmatprep.subr.mxu1 %v1703_v8 }
  0x6c   :  { %1373 = vmatpush3.msra.mxu0 %v330_v60  ;;  %1407 = vmatpush3.msra.mxu1 %v1870_v17 }
  0x6d   :  { %1374 = vmatprep.subr.mxu0 %v329_v61  ;;  %1408 = vmatprep.subr.mxu1 %v1703_v8 }
  0x6e   :  { %1375 = vmatpush3.msra.mxu0 %v329_v61  ;;  %1409 = vmatpush3.msra.mxu1 %v1874_v18 }
  0x6f   :  { %1376 = vmatprep.subr.mxu0 %v328_v62  ;;  %1410 = vmatprep.subr.mxu1 %v1703_v8 }
  0x70   :  { %1377 = vmatpush3.msra.mxu0 %v328_v62  ;;  %1411 = vmatpush3.msra.mxu1 %v1878_v19 }
  0x71   :  { %1378 = vmatprep.subr.mxu0 %v327_v0  ;;  %1412 = vmatprep.subr.mxu1 %v1703_v8 }
  0x72   :  { %1379 = vmatpush3.msra.mxu0 %v327_v0  ;;  %1420 = vmatprep.mubr.msk.f32.mxu1 %vm1704_vm4, %v1703_v8 }
  0x73   :  { %1380 = vmatprep.subr.mxu0 %v326_v3  ;;  %1413 = vmatpush3.msra.mxu1 %v1881_v20 }
  0x74   :  { %1381 = vmatpush3.msra.mxu0 %v326_v3  ;;  %1414 = vmatprep.subr.mxu1 %v1703_v8 }
  0x75   :  { %1383 = vmatmul.mubr.msk.f32.vlgmr.msra.gmra.mxu0 %vm1119_vm3, %v111_v4  ;;  %1415 = vmatpush3.msra.mxu1 %v1884_v21 }
  0x76   :  { %1385 = vmatprep.mubr.f32.mxu0 %v110_v5  ;;  %1416 = vmatprep.subr.mxu1 %v1703_v8 }
  0x77   :  { %1417 = vmatpush3.msra.mxu1 %v1890_v22 }
  0x78   :  { %1418 = vmatprep.subr.mxu1 %v1703_v8 }
  0x79   :  { %1386 = vmatmul.mubr.msk.f32.gmra.mxu0 %vm1119_vm3, %v113_v6  ;;  %1419 = vmatpush3.msra.mxu1 %v1894_v23  ;;  %v651_v6 = vld [vmem:[#allocation7 + $0xf8] sm:$0xff] }
  0x7a   :  { %1423 = vmatprep.subr.mxu0 %v651_v6 }
  0x7b   :  { %1424 = vmatpush3.msra.mxu0 %v651_v6  ;;  %v1705_v6 = vmov 1966171168  }
 0x113   :  { %v1308_v24 = vpop.f32.mrf.mxu0 }
 0x114   :  { %v1346_v25 = vpop.f32.mrf.mxu1 }
 0x115   :  { %v221_v26 = vpop.f32.mrf.mxu0  ;;  %v312_v33 = vadd.f32 %v1346_v25, %v1308_v24  ;;  %v650_v24 = vld [vmem:[#allocation7 + $0xf0] sm:$0xff]  ;;  %v649_v25 = vld [vmem:[#allocation7 + $0xe8] sm:$0xff] }
 0x116   :  { %v306_v28 = vpop.f32.mrf.mxu1  ;;  %1425 = vmatprep.subr.mxu0 %v650_v24 }
 0x117   :  { %v307_v34 = vadd.f32 %v306_v28, %v221_v26  ;;  %1426 = vmatpush3.msra.mxu0 %v650_v24  ;;  %v634_v26 = vld [vmem:[#allocation7 + $0x78] sm:$0xff]  ;;  %v633_v28 = vld [vmem:[#allocation7 + $0x70] sm:$0xff]  ;;  %v553_v24 = vunpack.c.l.s4 %v1705_v6  ;;  %v832_v6 = vld [vmem:[#allocation7 + $0x148] sm:$0xff] }
 0x118   :  { %v1349_v30 = vpop.f32.mrf.mxu1  ;;  %1427 = vmatprep.subr.mxu0 %v649_v25  ;;  %1461 = vmatprep.subr.mxu1 %v634_v26 }
 0x119   :  { %v1311_v27 = vpop.f32.mrf.mxu0  ;;  %1428 = vmatpush3.msra.mxu0 %v649_v25  ;;  %v554_v25 = vunpack.c.0.s8 %v553_v24  ;;  %v831_v24 = vld [vmem:[#allocation7 + $0x140] sm:$0xff] }
 0x11a   :  { %v316_v35 = vpop.f32.mrf.mxu1  ;;  %v322_v41 = vadd.f32 %v1349_v30, %v1311_v27  ;;  %v648_v27 = vld [vmem:[#allocation7 + $0xe0] sm:$0xff]  ;;  %v647_v30 = vld [vmem:[#allocation7 + $0xd8] sm:$0xff] }
 0x11b   :  { %v231_v31 = vpop.f32.mrf.mxu0  ;;  %1429 = vmatprep.subr.mxu0 %v648_v27 }
 0x11c   :  { %v317_v42 = vadd.f32 %v316_v35, %v231_v31  ;;  %1430 = vmatpush3.msra.mxu0 %v648_v27  ;;  %v632_v31 = vld [vmem:[#allocation7 + $0x68] sm:$0xff]  ;;  %v630_v35 = vld [vmem:[#allocation7 + $0x58] sm:$0xff] }
 0x11d   :  { %1431 = vmatprep.subr.mxu0 %v647_v30 }
 0x11e   :  { %1432 = vmatpush3.msra.mxu0 %v647_v30 }
 0x135   :  { %v1384_v32 = vpop.f32.mrf.mxu0 }
 0x136   :  { %v1899_v38 = vadd.f32 %v1384_v32, %v312_v33  ;;  %v646_v32 = vld [vmem:[#allocation7 + $0xd0] sm:$0xff]  ;;  %v631_v33 = vld [vmem:[#allocation7 + $0x60] sm:$0xff] }
 0x137   :  { %v408_v36 = vpop.f32.mrf.mxu0  ;;  %1433 = vmatprep.subr.mxu0 %v646_v32 }
 0x138   :  { %v1901_v39 = vadd.f32 %v408_v36, %v307_v34  ;;  %v443_v45 = vmul.f32 %v1899_v38, %v1899_v38  ;;  %1434 = vmatpush3.msra.mxu0 %v646_v32  ;;  %v645_v34 = vld [vmem:[#allocation7 + $0xc8] sm:$0xff]  ;;  %v644_v36 = vld [vmem:[#allocation7 + $0xc0] sm:$0xff] }
 0x139   :  { %v1387_v40 = vpop.f32.mrf.mxu0  ;;  %1435 = vmatprep.subr.mxu0 %v645_v34 }
 0x13a   :  { %v442_v43 = vmul.f32 %v1901_v39, %v1901_v39  ;;  %v433_v46 = vadd.f32 %v1899_v38, %v1901_v39  ;;  %v1909_v47 = vadd.f32 %v1387_v40, %v322_v41  ;;  %1436 = vmatpush3.msra.mxu0 %v645_v34  ;;  %v629_v40 = vld [vmem:[#allocation7 + $0x50] sm:$0xff]  ;;  %v643_v41 = vld [vmem:[#allocation7 + $0xb8] sm:$0xff] }
 0x13b   :  { %v418_v44 = vpop.f32.mrf.mxu0  ;;  %1437 = vmatprep.subr.mxu0 %v644_v36 }
 0x13c   :  { %v1911_v48 = vadd.f32 %v418_v44, %v317_v42  ;;  %v446_v49 = vadd.f32 %v443_v45, %v442_v43  ;;  %v445_v52 = vmul.f32 %v1909_v47, %v1909_v47  ;;  %1438 = vmatpush3.msra.mxu0 %v644_v36  ;;  %v628_v42 = vld [vmem:[#allocation7 + $0x48] sm:$0xff]  ;;  %v642_v43 = vld [vmem:[#allocation7 + $0xb0] sm:$0xff]  ;;  %v627_v44 = vld [vmem:[#allocation7 + $0x40] sm:$0xff] }
 0x13d   :  { %1439 = vmatprep.subr.mxu0 %v643_v41  ;;  %v641_v45 = vld [vmem:[#allocation7 + $0xa8] sm:$0xff] }
 0x13e   :  { %v434_v50 = vadd.f32 %v433_v46, %v1911_v48  ;;  %v444_v51 = vmul.f32 %v1911_v48, %v1911_v48  ;;  %1440 = vmatpush3.msra.mxu0 %v643_v41  ;;  %v626_v46 = vld [vmem:[#allocation7 + $0x38] sm:$0xff] }
 0x13f   :  { %1441 = vmatprep.subr.mxu0 %v642_v43 }
 0x140   :  { %v435_v53 = vadd.f32 %v434_v50, %v1909_v47  ;;  %v447_v54 = vadd.f32 %v446_v49, %v444_v51  ;;  %1442 = vmatpush3.msra.mxu0 %v642_v43  ;;  %v640_v49 = vld [vmem:[#allocation7 + $0xa0] sm:$0xff]  ;;  %v625_v50 = vld [vmem:[#allocation7 + $0x30] sm:$0xff]  ;;  %v639_v51 = vld [vmem:[#allocation7 + $0x98] sm:$0xff] }
 0x141   :  { %1443 = vmatprep.subr.mxu0 %v641_v45 }
 0x142   :  { %v436_v55 = vrot.slane %v435_v53, 4  ;;  %v448_v56 = vadd.f32 %v447_v54, %v445_v52  ;;  %1444 = vmatpush3.msra.mxu0 %v641_v45  ;;  %v624_v52 = vld [vmem:[#allocation7 + $0x28] sm:$0xff]  ;;  %v623_v54 = vld [vmem:[#allocation7 + $0x20] sm:$0xff] }
 0x143   :  { %1445 = vmatprep.subr.mxu0 %v640_v49 }
 0x144   :  { %v437_v57 = vadd.f32 %v436_v55, %v435_v53  ;;  %v449_v58 = vrot.slane %v448_v56, 4  ;;  %1446 = vmatpush3.msra.mxu0 %v640_v49  ;;  %v638_v53 = vld [vmem:[#allocation7 + $0x90] sm:$0xff]  ;;  %v637_v55 = vld [vmem:[#allocation7 + $0x88] sm:$0xff] }
 0x145   :  { %1447 = vmatprep.subr.mxu0 %v639_v51 }
 0x146   :  { %v438_v59 = vrot.slane %v437_v57, 2  ;;  %v450_v60 = vadd.f32 %v449_v58, %v448_v56  ;;  %1448 = vmatpush3.msra.mxu0 %v639_v51  ;;  %v622_v56 = vld [vmem:[#allocation7 + $0x18] sm:$0xff]  ;;  %v621_v58 = vld [vmem:[#allocation7 + $0x10] sm:$0xff] }
 0x147   :  { %1449 = vmatprep.subr.mxu0 %v638_v53 }
 0x148   :  { %v439_v61 = vadd.f32 %v438_v59, %v437_v57  ;;  %v451_v62 = vrot.slane %v450_v60, 2  ;;  %1450 = vmatpush3.msra.mxu0 %v638_v53  ;;  %v636_v57 = vld [vmem:[#allocation7 + $0x80] sm:$0xff]  ;;  %v620_v59 = vld [vmem:[#allocation7 + $0x8] sm:$0xff] }
 0x149   :  { %1451 = vmatprep.subr.mxu0 %v637_v55 }
 0x14a   :  { %v440_v63 = vrot.slane %v439_v61, 1  ;;  %v452_v0 = vadd.f32 %v451_v62, %v450_v60  ;;  %1452 = vmatpush3.msra.mxu0 %v637_v55  ;;  %v838_v60 = vld [vmem:[#allocation7 + $0x178] sm:$0xff] }
 0x14b   :  { %1453 = vmatprep.subr.mxu0 %v636_v57 }
 0x14c   :  { %v453_v2 = vrot.slane %v452_v0, 1  ;;  %v441_v3 = vadd.f32 %v440_v63, %v439_v61  ;;  %1454 = vmatpush3.msra.mxu0 %v636_v57  ;;  %v619_v61 = vld [vmem:[#allocation7] sm:$0xff] }
 0x14d   :  { %1499 = vmatprep.subr.mxu0 %v838_v60 }
 0x14e   :  { %v454_v4 = vadd.f32 %v453_v2, %v452_v0 }
 0x150   :  { %v456_v5 = vsel %vm455_vm5, %v441_v3, %v454_v4 }
 0x151   :  { %1421 = vmatmul.mubr.f32.vlgmr.msra.gmra.mxu1 %v456_v5 }
 0x152   :  { %1462 = vmatpush3.msra.mxu1 %v634_v26  ;;  %v1922_v26 = vsub.s32 %v554_v25, %v1780_v29  ;;  %v830_v25 = vld [vmem:[#allocation7 + $0x138] sm:$0xff] }
 0x153   :  { %1463 = vmatprep.subr.mxu1 %v633_v28 }
 0x154   :  { %1464 = vmatpush3.msra.mxu1 %v633_v28 }
 0x155   :  { %1465 = vmatprep.subr.mxu1 %v632_v31 }
 0x156   :  { %1466 = vmatpush3.msra.mxu1 %v632_v31  ;;  %v431_v31 = vld [vmem:[%s2048_s4] sm:$0x1] }
 0x157   :  { %1467 = vmatprep.subr.mxu1 %v631_v33 }
 0x158   :  { %1468 = vmatpush3.msra.mxu1 %v631_v33  ;;  %v1930_v33 = vsub.s32 0, %v1780_v29 }
 0x159   :  { %1469 = vmatprep.subr.mxu1 %v630_v35 }
 0x15a   :  { %1470 = vmatpush3.msra.mxu1 %v630_v35  ;;  %v432_v35 = vld [vmem:[%s2049_s5] sm:$0x1] }
 0x15b   :  { %1471 = vmatprep.subr.mxu1 %v629_v40 }
 0x15c   :  { %1472 = vmatpush3.msra.mxu1 %v629_v40 }
 0x15d   :  { %1473 = vmatprep.subr.mxu1 %v628_v42 }
 0x15e   :  { %1474 = vmatpush3.msra.mxu1 %v628_v42 }
 0x15f   :  { %1475 = vmatprep.subr.mxu1 %v627_v44 }
 0x160   :  { %1476 = vmatpush3.msra.mxu1 %v627_v44 }
 0x161   :  { %1477 = vmatprep.subr.mxu1 %v626_v46 }
 0x162   :  { %1478 = vmatpush3.msra.mxu1 %v626_v46 }
 0x163   :  { %1479 = vmatprep.subr.mxu1 %v625_v50 }
 0x164   :  { %1480 = vmatpush3.msra.mxu1 %v625_v50 }
 0x165   :  { %1481 = vmatprep.subr.mxu1 %v624_v52 }
 0x166   :  { %1482 = vmatpush3.msra.mxu1 %v624_v52 }
 0x167   :  { %1483 = vmatprep.subr.mxu1 %v623_v54 }
 0x168   :  { %1484 = vmatpush3.msra.mxu1 %v623_v54 }
 0x169   :  { %1485 = vmatprep.subr.mxu1 %v622_v56 }
 0x16a   :  { %1486 = vmatpush3.msra.mxu1 %v622_v56 }
 0x16b   :  { %1487 = vmatprep.subr.mxu1 %v621_v58 }
 0x16c   :  { %1488 = vmatpush3.msra.mxu1 %v621_v58 }
 0x16d   :  { %1489 = vmatprep.subr.mxu1 %v620_v59 }
 0x16e   :  { %1490 = vmatpush3.msra.mxu1 %v620_v59 }
 0x16f   :  { %1491 = vmatprep.subr.mxu1 %v619_v61 }
 0x170   :  { %1492 = vmatpush3.msra.mxu1 %v619_v61  ;;  %v836_v61 = vld [vmem:[#allocation7 + $0x168] sm:$0xff] }
 0x171   :  { %1537 = vmatprep.subr.mxu1 %v1703_v8 }
 0x211   :  { %v539_v62 = vpop.f32.mrf.mxu1 }
 0x212   :  { %v543_v63 = vmul.f32 0.001953125, %v539_v62 }
 0x213   :  { %v1422_v0 = vpop.f32.mrf.mxu1 }
 0x214   :  { %v544_v2 = vmul.f32 %v543_v63, %v543_v63 }
 0x216   :  { %v546_v3 = vrot.slane %v544_v2, 7 }
 0x218   :  { %v548_v4 = vsub.f32 %v543_v63, %v546_v3  ;;  %v834_v3 = vld [vmem:[#allocation7 + $0x158] sm:$0xff] }
 0x21a   :  { %v549_v5 = vadd.f32 1e-05, %v548_v4 }
 0x21c   :  { %1582 = vrsqrt.f32 %v549_v5  ;;  %v833_v5 = vld [vmem:[#allocation7 + $0x150] sm:$0xff] }
 0x229   :  { %v1583_v27 = vpop.eup %1582 }
 0x22a   :  { %v558_v28 = vrot.slane %v1583_v27, %v1922_v26  ;;  %v823_v27 = vld [vmem:[#allocation7 + $0x100] sm:$0xff] }
 0x22c   :  { %v559_v30 = vcombine.high %v558_v28, %v558_v28 }
 0x22e   :  { %v566_v32 = vrot.slane %v559_v30, %v1922_v26 }
 0x230   :  { %v568_v34 = vmul.f32 %v566_v32, %v431_v31 }
 0x232   :  { %v569_v36 = vmul.f32 %v568_v34, %v543_v63  ;;  %v575_v40 = vrot.slane %v568_v34, %v1930_v33 }
 0x234   :  { %v570_v41 = vsub.f32 %v432_v35, %v569_v36  ;;  %v577_v42 = vmul.f32 %v575_v40, %v1901_v39  ;;  %v578_v44 = vmul.f32 %v575_v40, %v1899_v38  ;;  %v579_v45 = vmul.f32 %v575_v40, %v1911_v48  ;;  %v837_v39 = vld [vmem:[#allocation7 + $0x170] sm:$0xff] }
 0x235   :  { %v580_v46 = vmul.f32 %v575_v40, %v1909_v47 }
 0x236   :  { %v585_v43 = vrot.slane %v570_v41, %v1930_v33 }
 0x238   :  { %v587_v49 = vadd.f32 %v585_v43, %v577_v42  ;;  %v588_v50 = vadd.f32 %v585_v43, %v578_v44  ;;  %v589_v51 = vadd.f32 %v585_v43, %v579_v45  ;;  %v590_v52 = vadd.f32 %v585_v43, %v580_v46 }
 0x23a   :  { %v1941_v53 = vmax.f32 %v587_v49, 0.0  ;;  %v1943_v54 = vmax.f32 %v588_v50, 0.0  ;;  %v1945_v55 = vmax.f32 %v589_v51, 0.0  ;;  %v1947_v56 = vmax.f32 %v590_v52, 0.0 }
 0x23c   :  { %1455 = vmatprep.mubr.f32.mxu0 %v1941_v53  ;;  %v595_v38 = vrot.slane %v1941_v53, 7  ;;  %v598_v48 = vrot.slane %v1947_v56, 7  ;;  %v596_v47 = vrot.slane %v1943_v54, 7  ;;  %v597_v57 = vrot.slane %v1945_v55, 7 }
 0x23d   :  { %1456 = vmatmul.mubr.f32.vlgmr.msra.gmra.mxu0 %v1943_v54  ;;  %v603_v62 = vrot.slane %v1941_v53, 1  ;;  %v604_v63 = vrot.slane %v1943_v54, 1 }
 0x23e   :  { %1500 = vmatpush3.msra.mxu0 %v838_v60  ;;  %1458 = vmatprep.mubr.f32.mxu0 %v1945_v55  ;;  %v602_v58 = vsel %vm100_vm0, %v598_v48, %v595_v38  ;;  %v601_v59 = vsel %vm100_vm0, %v595_v38, %v596_v47  ;;  %v835_v60 = vld [vmem:[#allocation7 + $0x160] sm:$0xff]  ;;  %v600_v0 = vsel %vm100_vm0, %v596_v47, %v597_v57 }
 0x23f   :  { %1501 = vmatprep.subr.mxu0 %v837_v39  ;;  %1493 = vmatprep.mubr.msk.f32.mxu1 %vm1118_vm1, %v602_v58  ;;  %v609_v2 = vsel %vm109_vm2, %v603_v62, %v604_v63  ;;  %v599_v4 = vsel %vm100_vm0, %v597_v57, %v598_v48 }
 0x240   :  { %1502 = vmatpush3.msra.mxu0 %v837_v39  ;;  %1494 = vmatmul.mubr.f32.vlgmr.msra.gmra.mxu1 %v601_v59 }
 0x241   :  { %1503 = vmatprep.subr.mxu0 %v836_v61  ;;  %1459 = vmatmul.mubr.f32.gmra.mxu0 %v1947_v56 }
 0x242   :  { %1496 = vmatprep.mubr.msk.f32.mxu1 %vm1118_vm1, %v600_v0  ;;  %1504 = vmatpush3.msra.mxu0 %v836_v61 }
 0x243   :  { %1505 = vmatprep.subr.mxu0 %v835_v60  ;;  %1531 = vmatprep.mubr.f32.mxu0 %v609_v2 }
 0x244   :  { %1506 = vmatpush3.msra.mxu0 %v835_v60  ;;  %1497 = vmatmul.mubr.f32.gmra.mxu1 %v599_v4 }
 0x245   :  { %1507 = vmatprep.subr.mxu0 %v834_v3  ;;  %1538 = vmatpush3.msra.mxu1 %v1833_v7  ;;  %v829_v7 = vld [vmem:[#allocation7 + $0x130] sm:$0xff] }
 0x246   :  { %1508 = vmatpush3.msra.mxu0 %v834_v3  ;;  %1539 = vmatprep.subr.mxu1 %v1703_v8 }
 0x247   :  { %1509 = vmatprep.subr.mxu0 %v833_v5  ;;  %1540 = vmatpush3.msra.mxu1 %v1836_v9  ;;  %v828_v9 = vld [vmem:[#allocation7 + $0x128] sm:$0xff] }
 0x248   :  { %1510 = vmatpush3.msra.mxu0 %v833_v5  ;;  %1541 = vmatprep.subr.mxu1 %v1703_v8 }
 0x249   :  { %1511 = vmatprep.subr.mxu0 %v832_v6  ;;  %1542 = vmatpush3.msra.mxu1 %v1842_v10  ;;  %v827_v10 = vld [vmem:[#allocation7 + $0x120] sm:$0xff] }
 0x24a   :  { %1512 = vmatpush3.msra.mxu0 %v832_v6  ;;  %1543 = vmatprep.subr.mxu1 %v1703_v8 }
 0x24b   :  { %1513 = vmatprep.subr.mxu0 %v831_v24  ;;  %1544 = vmatpush3.msra.mxu1 %v1846_v11  ;;  %v826_v11 = vld [vmem:[#allocation7 + $0x118] sm:$0xff] }
 0x24c   :  { %1514 = vmatpush3.msra.mxu0 %v831_v24  ;;  %1545 = vmatprep.subr.mxu1 %v1703_v8 }
 0x24d   :  { %1515 = vmatprep.subr.mxu0 %v830_v25  ;;  %1546 = vmatpush3.msra.mxu1 %v1850_v12  ;;  %v825_v12 = vld [vmem:[#allocation7 + $0x110] sm:$0xff] }
 0x24e   :  { %1516 = vmatpush3.msra.mxu0 %v830_v25  ;;  %1547 = vmatprep.subr.mxu1 %v1703_v8 }
 0x24f   :  { %1517 = vmatprep.subr.mxu0 %v829_v7  ;;  %1548 = vmatpush3.msra.mxu1 %v1854_v13  ;;  %v824_v13 = vld [vmem:[#allocation7 + $0x108] sm:$0xff] }
 0x250   :  { %1518 = vmatpush3.msra.mxu0 %v829_v7  ;;  %1549 = vmatprep.subr.mxu1 %v1703_v8 }
 0x251   :  { %1519 = vmatprep.subr.mxu0 %v828_v9  ;;  %1550 = vmatpush3.msra.mxu1 %v1858_v14  ;;  %v605_v14 = vrot.slane %v1945_v55, 1 }
 0x252   :  { %1520 = vmatpush3.msra.mxu0 %v828_v9  ;;  %1551 = vmatprep.subr.mxu1 %v1703_v8 }
 0x253   :  { %1521 = vmatprep.subr.mxu0 %v827_v10  ;;  %1552 = vmatpush3.msra.mxu1 %v1862_v15  ;;  %v606_v15 = vrot.slane %v1947_v56, 1 }
 0x254   :  { %1522 = vmatpush3.msra.mxu0 %v827_v10  ;;  %1553 = vmatprep.subr.mxu1 %v1703_v8 }
 0x255   :  { %1523 = vmatprep.subr.mxu0 %v826_v11  ;;  %1554 = vmatpush3.msra.mxu1 %v1866_v16  ;;  %v608_v16 = vsel %vm109_vm2, %v604_v63, %v605_v14 }
 0x256   :  { %1524 = vmatpush3.msra.mxu0 %v826_v11  ;;  %1555 = vmatprep.subr.mxu1 %v1703_v8 }
 0x257   :  { %1525 = vmatprep.subr.mxu0 %v825_v12  ;;  %1556 = vmatpush3.msra.mxu1 %v1870_v17  ;;  %v607_v17 = vsel %vm109_vm2, %v605_v14, %v606_v15 }
 0x258   :  { %1526 = vmatpush3.msra.mxu0 %v825_v12  ;;  %1557 = vmatprep.subr.mxu1 %v1703_v8  ;;  %v928_v12 = vld [vmem:[%s2050_s6] sm:$0x1]  ;;  %s1706_s6 = smov [#allocation10]  }
 0x259   :  { %1527 = vmatprep.subr.mxu0 %v824_v13  ;;  %1558 = vmatpush3.msra.mxu1 %v1874_v18  ;;  %v610_v18 = vsel %vm109_vm2, %v606_v15, %v603_v62  ;;  %s1088_s29 = sshll.u32 %s1706_s6, 4  ;;  %s1089_s29 = int_to_ptr.vmem [resolvable:$true] %s1088_s29 }
 0x25a   :  { %1528 = vmatpush3.msra.mxu0 %v824_v13  ;;  %1559 = vmatprep.subr.mxu1 %v1703_v8  ;;  %p1674_p7 = scmp.lt.s32.totalorder %s1089_s29, %s1089_s29 }
 0x25b   :  { %1529 = vmatprep.subr.mxu0 %v823_v27  ;;  %1560 = vmatpush3.msra.mxu1 %v1878_v19 }
 0x25c   :  { %1530 = vmatpush3.msra.mxu0 %v823_v27  ;;  %1561 = vmatprep.subr.mxu1 %v1703_v8  ;;  %v929_v27 = vld [vmem:[%s2051_s7] sm:$0x1]  ;;  %s1669_s7 = scalar_lea.vmem %s1089_s29, 512 }
 0x25d   :  { %1532 = vmatmul.mubr.msk.f32.vlgmr.msra.gmra.mxu0 %vm1119_vm3, %v608_v16  ;;  %1562 = vmatpush3.msra.mxu1 %v1881_v20  ;;  %p1670_p6 = scmp.ne.s32.totalorder %s1089_s29, %s1669_s7  ;;  %p1675_p8 = scmp.lt.s32.totalorder %s1669_s7, %s1669_s7 }
 0x25e   :  { %1534 = vmatprep.mubr.f32.mxu0 %v607_v17  ;;  %1563 = vmatprep.subr.mxu1 %v1703_v8 }
 0x25f   :  { %1564 = vmatpush3.msra.mxu1 %v1884_v21  ;;  %1569 = vmatprep.mubr.msk.f32.mxu1 %vm1704_vm4, %v1703_v8  ;;  %p1676_p9 = por %p1675_p8, %p1674_p7 }
 0x260   :  { %1565 = vmatprep.subr.mxu1 %v1703_v8 }
 0x261   :  { %1535 = vmatmul.mubr.msk.f32.gmra.mxu0 %vm1119_vm3, %v610_v18  ;;  %1566 = vmatpush3.msra.mxu1 %v1890_v22  ;;  %p1677_p10 = pnand %p1676_p9, %p1670_p6 }
 0x262   :  { %1567 = vmatprep.subr.mxu1 %v1703_v8 }
 0x263   :  { %1568 = vmatpush3.msra.mxu1 %v1894_v23 }
 0x2fd   :  { %v1457_v19 = vpop.f32.mrf.mxu0 }
 0x2ff   :  { %v718_v20 = vpop.f32.mrf.mxu0 }
 0x300   :  { %v1495_v21 = vpop.f32.mrf.mxu1 }
 0x301   :  { %v1460_v28 = vpop.f32.mrf.mxu0  ;;  %v809_v34 = vadd.f32 %v1495_v21, %v1457_v19 }
 0x302   :  { %v803_v30 = vpop.f32.mrf.mxu1 }
 0x303   :  { %v728_v31 = vpop.f32.mrf.mxu0  ;;  %v804_v35 = vadd.f32 %v803_v30, %v718_v20 }
 0x304   :  { %v1498_v32 = vpop.f32.mrf.mxu1 }
 0x305   :  { %v819_v22 = vadd.f32 %v1498_v32, %v1460_v28 }
 0x306   :  { %v813_v36 = vpop.f32.mrf.mxu1 }
 0x307   :  { %v814_v43 = vadd.f32 %v813_v36, %v728_v31 }
 0x31d   :  { %v1533_v29 = vpop.f32.mrf.mxu0 }
 0x31e   :  { %v925_v1 = vadd.f32 %v1533_v29, %v809_v34 }
 0x31f   :  { %v905_v40 = vpop.f32.mrf.mxu0 }
 0x320   :  { %v924_v41 = vadd.f32 %v905_v40, %v804_v35  ;;  %v940_v23 = vmul.f32 %v925_v1, %v925_v1  ;;  %v1587_v35 = vld [vmem:[#allocation2 + $0x8] sm:$0xff] }
 0x321   :  { %v1536_v42 = vpop.f32.mrf.mxu0 }
 0x322   :  { %v939_v8 = vmul.f32 %v924_v41, %v924_v41  ;;  %v930_v45 = vadd.f32 %v925_v1, %v924_v41  ;;  %v927_v46 = vadd.f32 %v1536_v42, %v819_v22  ;;  %v1588_v42 = vld [vmem:[#allocation2 + $0x18] sm:$0xff] }
 0x323   :  { %v915_v44 = vpop.f32.mrf.mxu0 }
 0x324   :  { %v926_v49 = vadd.f32 %v915_v44, %v814_v43  ;;  %v943_v50 = vadd.f32 %v940_v23, %v939_v8  ;;  %v942_v53 = vmul.f32 %v927_v46, %v927_v46 }
 0x326   :  { %v931_v51 = vadd.f32 %v930_v45, %v926_v49  ;;  %v941_v52 = vmul.f32 %v926_v49, %v926_v49 }
 0x328   :  { %v932_v54 = vadd.f32 %v931_v51, %v927_v46  ;;  %v944_v55 = vadd.f32 %v943_v50, %v941_v52 }
 0x32a   :  { %v933_v56 = vrot.slane %v932_v54, 4  ;;  %v945_v39 = vadd.f32 %v944_v55, %v942_v53 }
 0x32c   :  { %v934_v38 = vadd.f32 %v933_v56, %v932_v54  ;;  %v946_v48 = vrot.slane %v945_v39, 4 }
 0x32e   :  { %v935_v47 = vrot.slane %v934_v38, 2  ;;  %v947_v57 = vadd.f32 %v946_v48, %v945_v39 }
 0x330   :  { %v936_v58 = vadd.f32 %v935_v47, %v934_v38  ;;  %v948_v59 = vrot.slane %v947_v57, 2 }
 0x332   :  { %v937_v61 = vrot.slane %v936_v58, 1  ;;  %v949_v62 = vadd.f32 %v948_v59, %v947_v57 }
 0x334   :  { %v950_v63 = vrot.slane %v949_v62, 1  ;;  %v938_v60 = vadd.f32 %v937_v61, %v936_v58 }
 0x336   :  { %v951_v0 = vadd.f32 %v950_v63, %v949_v62 }
 0x338   :  { %v952_v2 = vsel %vm455_vm5, %v938_v60, %v951_v0 }
 0x339   :  { %1570 = vmatmul.mubr.f32.vlgmr.msra.gmra.mxu1 %v952_v2 }
 0x3f9   :  { %v1019_v3 = vpop.f32.mrf.mxu1 }
 0x3fa   :  { %v1023_v4 = vmul.f32 0.001953125, %v1019_v3 }
 0x3fb   :  { %v1571_v5 = vpop.f32.mrf.mxu1 }
 0x3fc   :  { %v1024_v6 = vmul.f32 %v1023_v4, %v1023_v4 }
 0x3fe   :  { %v1026_v24 = vrot.slane %v1024_v6, 7 }
 0x400   :  { %v1028_v25 = vsub.f32 %v1023_v4, %v1026_v24 }
 0x402   :  { %v1029_v7 = vadd.f32 1e-05, %v1028_v25 }
 0x404   :  { %1584 = vrsqrt.f32 %v1029_v7 }
 0x411   :  { %v1585_v9 = vpop.eup %1584 }
 0x412   :  { %v1038_v10 = vrot.slane %v1585_v9, %v1922_v26 }
 0x414   :  { %v1039_v11 = vcombine.high %v1038_v10, %v1038_v10 }
 0x416   :  { %v1046_v13 = vrot.slane %v1039_v11, %v1922_v26  ;;  %v1586_v26 = vld [vmem:[#allocation2] sm:$0xff] }
 0x418   :  { %v1048_v14 = vmul.f32 %v1046_v13, %v928_v12 }
 0x41a   :  { %v1049_v15 = vmul.f32 %v1048_v14, %v1023_v4  ;;  %v1055_v16 = vrot.slane %v1048_v14, %v1930_v33 }
 0x41c   :  { %v1050_v17 = vsub.f32 %v929_v27, %v1049_v15  ;;  %v1057_v18 = vmul.f32 %v1055_v16, %v924_v41  ;;  %v1058_v20 = vmul.f32 %v1055_v16, %v925_v1  ;;  %v1059_v21 = vmul.f32 %v1055_v16, %v926_v49 }
 0x41d   :  { %v1060_v28 = vmul.f32 %v1055_v16, %v927_v46 }
 0x41e   :  { %v1065_v19 = vrot.slane %v1050_v17, %v1930_v33 }
 0x420   :  { %v1067_v30 = vadd.f32 %v1065_v19, %v1057_v18  ;;  %v1068_v31 = vadd.f32 %v1065_v19, %v1058_v20  ;;  %v1069_v32 = vadd.f32 %v1065_v19, %v1059_v21  ;;  %v1070_v29 = vadd.f32 %v1065_v19, %v1060_v28 }
 0x422   :  { %v1071_v34 = vadd.f32 %v1586_v26, %v1067_v30  ;;  %v1072_v36 = vadd.f32 %v1587_v35, %v1068_v31  ;;  %v1073_v40 = vadd.f32 %v1069_v32, %v1786_v37  ;;  %v1074_v22 = vadd.f32 %v1588_v42, %v1070_v29 }
 0x424   :  { %v1075_v41 = vmax.f32 %v1071_v34, 0.0  ;;  %v1076_v43 = vmax.f32 %v1072_v36, 0.0  ;;  %v1077_v33 = vmax.f32 %v1073_v40, 0.0  ;;  %v1078_v1 = vmax.f32 %v1074_v22, 0.0 }
 0x426   :  { %1079 = vst [vmem:[#allocation10] sm:$0xff] %v1075_v41  ;;  %1080 = vst [vmem:[#allocation10 + $0x8] sm:$0xff] %v1076_v43 }
 0x427   :  { %1081 = vst [vmem:[#allocation10 + $0x10] sm:$0xff] %v1077_v33  ;;  %1082 = vst [vmem:[#allocation10 + $0x18] sm:$0xff] %v1078_v1 }
 0x428   :  { %1680 = shalt.err (!%p1677_p10)
}
 0x429   :  { %1094 = dma.vmem_to_hbm [thread:$0]  %s1089_s29, 512, %s2052_s8, [#allocation4], %s1699_s10, %s1699_s10, %s1700_s11  }
 0x42a   :  { %1695 = dma.done.wait [#allocation4], 512  }
 0x42b   :  { %1696 = vsyncadd [#allocation4], 4294966784 }
 0x42c   :  { %1098 = vsyncpa [#allocation3], 1 }
 0x42d   :  { %1099 = vsyncpa [#allocation6], 1 }
 0x42e   :  { %1100 = vsyncpa [#allocation9], 1 }
 0x42f   :  { %1101 = vsyncpa [#allocation4], 1 }

</bundles_post_ra>
